<compile_context>
chip_gen: v6e
topology: v6e:2x2x1
jax: 0.10.0
libtpu: 0.0.40
codegen_flags: <defaults>
</compile_context>

<pallas_src>
import jax
import jax.numpy as jnp
from jax.experimental import pallas as pl
from jax.experimental.pallas import tpu as pltpu


def _round_up(x, m):
    return ((x + m - 1) // m) * m


def _fused_probe_kernel(x_ref, w1_ref, b1_ref, w2o_ref, b2o_ref, w2c_ref, b2c_ref,
                        obj_ref, col_ref):
    """One batch tile: h = relu(x @ W1 + b1); obj = h_o @ W2o + b2o; col = h_c @ W2c + b2c."""
    x = x_ref[...]
    # Fused first layer for both probes (MXU, f32 accumulation).
    h = jnp.dot(x, w1_ref[...], preferred_element_type=jnp.float32)
    h = jnp.maximum(h + b1_ref[...], 0.0)      # bias + ReLU in f32 (VPU-safe on v5e)
    h = h.astype(w2o_ref.dtype)                # back to compute dtype for the 2nd MXU pass

    hp = w2o_ref.shape[0]                      # per-probe lane-padded hidden width (static)
    h_obj = h[:, :hp]                          # 128-aligned static slices -> no relayout
    h_col = h[:, hp:]

    # Second layer: one dense GEMM per probe (no block-diagonal zero work).
    y_obj = jnp.dot(h_obj, w2o_ref[...], preferred_element_type=jnp.float32) + b2o_ref[...]
    y_col = jnp.dot(h_col, w2c_ref[...], preferred_element_type=jnp.float32) + b2c_ref[...]
    obj_ref[...] = y_obj.astype(obj_ref.dtype)
    col_ref[...] = y_col.astype(col_ref.dtype)


def fused_mlp_probe(x, w1, b1, w2_obj, b2_obj, w2_col, b2_col, *, block_rows=256):
    """Runs both probe MLPs as one Pallas kernel.

    x:      (B, D_in)           compute dtype (f32 or bf16); D_in need not be 128-aligned
    w1:     (D_in, 2*Hp)        compute dtype  (Hp = per-probe hidden, padded to 128)
    b1:     (1, 2*Hp)           f32
    w2_obj: (Hp, n_obj_pad)     compute dtype  (n_obj_pad % 128 == 0)
    b2_obj: (1, n_obj_pad)      f32
    w2_col: (Hp, n_col_pad)     compute dtype
    b2_col: (1, n_col_pad)      f32
    returns (obj_out, col_out)  f32, shapes (B, n_obj_pad) and (B, n_col_pad)
    """
    B, D_in = x.shape
    H = w1.shape[1]
    n_obj_pad = w2_obj.shape[1]
    n_col_pad = w2_col.shape[1]

    # Row tile: multiple of 8 (sublane).  The last grid step may be a partial
    # tile (OOB reads padded / OOB writes masked) so no jnp.pad copy of x.
    tm = _round_up(min(block_rows, max(B, 8)), 8)
    nb = pl.cdiv(B, tm)
    if nb < 2 and B > 8:
        # Keep >= 2 grid steps so dimension_semantics=("parallel",) can use
        # both v7x TensorCores; a no-op on single-TC v5e/v6e.
        tm = _round_up(pl.cdiv(B, 2), 8)
        nb = pl.cdiv(B, tm)

    # --- VMEM budget: 2x streamed x-tile + 2x out-tiles + 1x weights/biases
    # + in-kernel activations, with ~30% headroom.  Clamp to [32 MiB, 64 MiB].
    x_bytes = x.dtype.itemsize
    w_bytes = (int(w1.size) * w1.dtype.itemsize
               + int(w2_obj.size) * w2_obj.dtype.itemsize
               + int(w2_col.size) * w2_col.dtype.itemsize
               + 4 * int(b1.size + b2_obj.size + b2_col.size))
    stream_bytes = 2 * tm * D_in * x_bytes + 2 * tm * (n_obj_pad + n_col_pad) * 4
    act_bytes = tm * (H + n_obj_pad + n_col_pad) * 4
    need = w_bytes + stream_bytes + act_bytes
    vmem_limit = int(min(max(int(need * 1.3), 32 * 1024 * 1024), 64 * 1024 * 1024))

    hp = H // 2
    flops = 2 * B * (D_in * H + hp * (n_obj_pad + n_col_pad))
    bytes_accessed = (B * D_in * x_bytes + w_bytes + 4 * B * (n_obj_pad + n_col_pad))

    grid_spec = pltpu.PrefetchScalarGridSpec(
        num_scalar_prefetch=0,
        grid=(nb,),
        in_specs=[
            # Streamed batch tile of x (auto-pipelined, double-buffered).
            pl.BlockSpec((tm, D_in), lambda i: (i, 0)),
            # Weights / biases: whole array resident in VMEM exactly once
            # (no per-step DMA, no double buffering).
            pl.BlockSpec(memory_space=pltpu.MemorySpace.VMEM),   # w1
            pl.BlockSpec(memory_space=pltpu.MemorySpace.VMEM),   # b1
            pl.BlockSpec(memory_space=pltpu.MemorySpace.VMEM),   # w2_obj
            pl.BlockSpec(memory_space=pltpu.MemorySpace.VMEM),   # b2_obj
            pl.BlockSpec(memory_space=pltpu.MemorySpace.VMEM),   # w2_col
            pl.BlockSpec(memory_space=pltpu.MemorySpace.VMEM),   # b2_col
        ],
        out_specs=(
            pl.BlockSpec((tm, n_obj_pad), lambda i: (i, 0)),
            pl.BlockSpec((tm, n_col_pad), lambda i: (i, 0)),
        ),
    )

    obj_out, col_out = pl.pallas_call(
        _fused_probe_kernel,
        out_shape=(
            jax.ShapeDtypeStruct((B, n_obj_pad), jnp.float32),
            jax.ShapeDtypeStruct((B, n_col_pad), jnp.float32),
        ),
        grid_spec=grid_spec,
        compiler_params=pltpu.CompilerParams(
            dimension_semantics=("parallel",),        # megacore sharding on v7x
            vmem_limit_bytes=vmem_limit,
        ),
        cost_estimate=pl.CostEstimate(
            flops=flops, transcendentals=0, bytes_accessed=bytes_accessed
        ),
    )(x, w1, b1, w2_obj, b2_obj, w2_col, b2_col)
    return obj_out, col_out


class BoardRecoveryProbeJAX:
    """JAX/Pallas port of BoardRecoveryProbe (forward path)."""

    def __init__(self, key, num_cells, num_objects, num_colors,
                 intermediate_dim, input_dim=768,
                 compute_dtype=jnp.bfloat16, block_rows=256):
        self.input_dim = input_dim
        self.intermediate_dim = intermediate_dim
        self.num_cells = num_cells
        self.num_objects = num_objects
        self.num_colors = num_colors
        self.compute_dtype = compute_dtype
        self.block_rows = block_rows

        k = jax.random.split(key, 4)
        std = 0.02
        # Per-probe params stored as (in, out) so y = x @ W + b matches
        # PyTorch's x @ W.T + b; biases zero per _init_weights.
        self.obj_w1 = std * jax.random.normal(k[0], (input_dim, intermediate_dim), jnp.float32)
        self.obj_w2 = std * jax.random.normal(k[1], (intermediate_dim, num_objects * num_cells), jnp.float32)
        self.col_w1 = std * jax.random.normal(k[2], (input_dim, intermediate_dim), jnp.float32)
        self.col_w2 = std * jax.random.normal(k[3], (intermediate_dim, num_colors * num_cells), jnp.float32)
        self.obj_b1 = jnp.zeros((intermediate_dim,), jnp.float32)
        self.obj_b2 = jnp.zeros((num_objects * num_cells,), jnp.float32)
        self.col_b1 = jnp.zeros((intermediate_dim,), jnp.float32)
        self.col_b2 = jnp.zeros((num_colors * num_cells,), jnp.float32)

        # --- Fused, lane-padded parameters (built + pre-cast once at init). ---
        self.n_obj = num_objects * num_cells
        self.n_col = num_colors * num_cells
        hp = _round_up(intermediate_dim, 128)        # per-probe hidden, lane-padded
        self._hp = hp
        self._n_obj_pad = _round_up(self.n_obj, 128)
        self._n_col_pad = _round_up(self.n_col, 128)
        H = 2 * hp

        # Fused first layer: obj hidden in cols [0, hp), col hidden in [hp, 2*hp).
        w1 = jnp.zeros((input_dim, H), jnp.float32)
        w1 = w1.at[:, :intermediate_dim].set(self.obj_w1)
        w1 = w1.at[:, hp:hp + intermediate_dim].set(self.col_w1)
        b1 = jnp.zeros((1, H), jnp.float32)
        b1 = b1.at[0, :intermediate_dim].set(self.obj_b1)
        b1 = b1.at[0, hp:hp + intermediate_dim].set(self.col_b1)

        # Separate second layers (dense, no zero block-diagonal padding rows are 0).
        w2o = jnp.zeros((hp, self._n_obj_pad), jnp.float32)
        w2o = w2o.at[:intermediate_dim, :self.n_obj].set(self.obj_w2)
        w2c = jnp.zeros((hp, self._n_col_pad), jnp.float32)
        w2c = w2c.at[:intermediate_dim, :self.n_col].set(self.col_w2)
        b2o = jnp.zeros((1, self._n_obj_pad), jnp.float32).at[0, :self.n_obj].set(self.obj_b2)
        b2c = jnp.zeros((1, self._n_col_pad), jnp.float32).at[0, :self.n_col].set(self.col_b2)

        cd = compute_dtype
        self.w1_fused = w1.astype(cd)
        self.w2_obj = w2o.astype(cd)
        self.w2_col = w2c.astype(cd)
        self.b1_fused, self.b2_obj, self.b2_col = b1, b2o, b2c

    def __call__(self, inputs, y_objects=None, y_colors=None):
        # Flatten leading dims like torch's Linear + reshape(-1, ...); single cast.
        x = inputs.reshape(-1, self.input_dim).astype(self.compute_dtype)

        obj_out, col_out = fused_mlp_probe(
            x, self.w1_fused, self.b1_fused,
            self.w2_obj, self.b2_obj, self.w2_col, self.b2_col,
            block_rows=self.block_rows,
        )

        object_logits = obj_out[:, :self.n_obj].reshape(-1, self.num_cells, self.num_objects)
        color_logits = col_out[:, :self.n_col].reshape(-1, self.num_cells, self.num_colors)

        if y_objects is not None and y_colors is not None:
            # TODO(synk): loss computed in plain JAX (not inside the Pallas kernel).
            object_loss = _cross_entropy(object_logits, y_objects)
            color_loss = _cross_entropy(color_logits, y_colors)
            return object_logits, color_logits, object_loss, color_loss
        return object_logits, color_logits, None, None


def _cross_entropy(logits, targets):
    """Mean softmax cross-entropy, matching F.cross_entropy(view(-1, C), view(-1))."""
    logits = logits.reshape(-1, logits.shape[-1]).astype(jnp.float32)
    targets = targets.reshape(-1)
    logz = jax.nn.logsumexp(logits, axis=-1)
    picked = jnp.take_along_axis(logits, targets[:, None], axis=-1)[:, 0]
    return jnp.mean(logz - picked)


def _reference(inputs, probe):
    """Pure-JAX f32 (highest precision) reference using the un-fused, un-padded params."""
    hi = jax.lax.Precision.HIGHEST

    def mlp(x, w1, b1, w2, b2):
        h = jnp.maximum(jnp.dot(x, w1, precision=hi) + b1, 0.0)
        return jnp.dot(h, w2, precision=hi) + b2

    x = inputs.reshape(-1, probe.input_dim).astype(jnp.float32)
    o = mlp(x, probe.obj_w1, probe.obj_b1, probe.obj_w2, probe.obj_b2)
    c = mlp(x, probe.col_w1, probe.col_b1, probe.col_w2, probe.col_b2)
    return (o.reshape(-1, probe.num_cells, probe.num_objects),
            c.reshape(-1, probe.num_cells, probe.num_colors))


if __name__ == "__main__":
    key = jax.random.PRNGKey(0)
    k_param, k_x, k_yo, k_yc = jax.random.split(key, 4)

    # Small shapes consistent with the module's forward.
    input_dim = 128
    intermediate_dim = 32
    num_cells = 9
    num_objects = 4
    num_colors = 6
    lead = (2, 5)          # flattened batch = 10: exercises a partial last tile
                           # and a 2-step "parallel" grid (no jnp.pad of x)
    B = 2 * 5

    x = jax.random.normal(k_x, lead + (input_dim,), jnp.float32)

    # ---- f32 compute path (near-exact) ----
    probe_f32 = BoardRecoveryProbeJAX(
        k_param, num_cells=num_cells, num_objects=num_objects,
        num_colors=num_colors, intermediate_dim=intermediate_dim,
        input_dim=input_dim, compute_dtype=jnp.float32, block_rows=8)
    obj_f32, col_f32, lo, lc = probe_f32(x)
    jax.block_until_ready((obj_f32, col_f32))
    ref_obj, ref_col = _reference(x, probe_f32)

    assert obj_f32.shape == (B, num_cells, num_objects)
    assert col_f32.shape == (B, num_cells, num_colors)
    assert lo is None and lc is None
    assert jnp.allclose(obj_f32, ref_obj, atol=1e-3, rtol=1e-3)
    assert jnp.allclose(col_f32, ref_col, atol=1e-3, rtol=1e-3)

    # ---- loss path (losses computed in plain JAX, on kernel logits) ----
    y_obj = jax.random.randint(k_yo, (B, num_cells), 0, num_objects)
    y_col = jax.random.randint(k_yc, (B, num_cells), 0, num_colors)
    _, _, obj_loss, col_loss = probe_f32(x, y_obj, y_col)
    jax.block_until_ready((obj_loss, col_loss))
    ref_ol = _cross_entropy(ref_obj, y_obj)
    ref_cl = _cross_entropy(ref_col, y_col)
    assert jnp.allclose(obj_loss, ref_ol, atol=1e-3, rtol=1e-3)
    assert jnp.allclose(col_loss, ref_cl, atol=1e-3, rtol=1e-3)

    # ---- bf16 (default) compute path: bf16 GEMMs, f32 accumulation/epilogue ----
    probe_bf16 = BoardRecoveryProbeJAX(
        k_param, num_cells=num_cells, num_objects=num_objects,
        num_colors=num_colors, intermediate_dim=intermediate_dim,
        input_dim=input_dim, block_rows=256)   # default compute_dtype=bf16;
                                               # block_rows=256 exercises the >=2-step shrink
    obj_bf, col_bf, _, _ = probe_bf16(x)
    jax.block_until_ready((obj_bf, col_bf))
    assert jnp.allclose(obj_bf, ref_obj, atol=3e-2, rtol=3e-2)
    assert jnp.allclose(col_bf, ref_col, atol=3e-2, rtol=3e-2)

    print("KERNEL_OK")
</pallas_src>

<mosaic_0001>
module attributes {stable_mosaic.version = 11 : i64} {
  func.func @_fused_probe_kernel(%arg0: i32, %arg1: memref<8x128xf32, #tpu.memory_space<vmem>>, %arg2: memref<128x256xf32, #tpu.memory_space<vmem>>, %arg3: memref<1x256xf32, #tpu.memory_space<vmem>>, %arg4: memref<128x128xf32, #tpu.memory_space<vmem>>, %arg5: memref<1x128xf32, #tpu.memory_space<vmem>>, %arg6: memref<128x128xf32, #tpu.memory_space<vmem>>, %arg7: memref<1x128xf32, #tpu.memory_space<vmem>>, %arg8: memref<8x128xf32, #tpu.memory_space<vmem>>, %arg9: memref<8x128xf32, #tpu.memory_space<vmem>>) attributes {dimension_semantics = [#tpu.dimension_semantics<parallel>], iteration_bounds = array<i64: 2>, scalar_prefetch = 0 : i64, scratch_operands = 0 : i64, tpu.core_type = #tpu.core_type<tc>, window_params = [{transform_indices = @transform_0, window_bounds = array<i64: 8, 128>}, {pipeline_mode = #tpu.pipeline_mode<synchronous>, transform_indices = @transform_1, window_bounds = array<i64: 128, 256>}, {pipeline_mode = #tpu.pipeline_mode<synchronous>, transform_indices = @transform_2, window_bounds = array<i64: 1, 256>}, {pipeline_mode = #tpu.pipeline_mode<synchronous>, transform_indices = @transform_3, window_bounds = array<i64: 128, 128>}, {pipeline_mode = #tpu.pipeline_mode<synchronous>, transform_indices = @transform_4, window_bounds = array<i64: 1, 128>}, {pipeline_mode = #tpu.pipeline_mode<synchronous>, transform_indices = @transform_5, window_bounds = array<i64: 128, 128>}, {pipeline_mode = #tpu.pipeline_mode<synchronous>, transform_indices = @transform_6, window_bounds = array<i64: 1, 128>}, {transform_indices = @transform_7, window_bounds = array<i64: 8, 128>}, {transform_indices = @transform_8, window_bounds = array<i64: 8, 128>}]} {
    %c0 = arith.constant 0 : index
    %c0_0 = arith.constant 0 : index
    %0 = vector.load %arg1[%c0, %c0_0] : memref<8x128xf32, #tpu.memory_space<vmem>>, vector<8x128xf32>
    %c0_1 = arith.constant 0 : index
    %c0_2 = arith.constant 0 : index
    %1 = vector.load %arg2[%c0_1, %c0_2] : memref<128x256xf32, #tpu.memory_space<vmem>>, vector<128x256xf32>
    %cst = arith.constant dense<0.000000e+00> : vector<8x256xf32>
    %2 = tpu.matmul %0, %1, %cst {dimension_numbers = #tpu.dot_dimension_numbers<[1], [0], [0], [1], [0, 0, 1, 1], [], []>} : vector<8x128xf32>, vector<128x256xf32>, vector<8x256xf32> -> vector<8x256xf32>
    %c0_3 = arith.constant 0 : index
    %c0_4 = arith.constant 0 : index
    %3 = vector.load %arg3[%c0_3, %c0_4] : memref<1x256xf32, #tpu.memory_space<vmem>>, vector<1x256xf32>
    %4 = vector.broadcast %3 : vector<1x256xf32> to vector<8x256xf32>
    %5 = arith.addf %2, %4 : vector<8x256xf32>
    %cst_5 = arith.constant 0.000000e+00 : f32
    %6 = vector.broadcast %cst_5 : f32 to vector<8x256xf32>
    %7 = arith.maximumf %5, %6 : vector<8x256xf32>
    %8 = vector.extract_strided_slice %7 {offsets = [0, 0], sizes = [8, 128], strides = [1, 1]} : vector<8x256xf32> to vector<8x128xf32>
    %9 = vector.extract_strided_slice %7 {offsets = [0, 128], sizes = [8, 128], strides = [1, 1]} : vector<8x256xf32> to vector<8x128xf32>
    %c0_6 = arith.constant 0 : index
    %c0_7 = arith.constant 0 : index
    %10 = vector.load %arg4[%c0_6, %c0_7] : memref<128x128xf32, #tpu.memory_space<vmem>>, vector<128x128xf32>
    %cst_8 = arith.constant dense<0.000000e+00> : vector<8x128xf32>
    %11 = tpu.matmul %8, %10, %cst_8 {dimension_numbers = #tpu.dot_dimension_numbers<[1], [0], [0], [1], [0, 0, 1, 1], [], []>} : vector<8x128xf32>, vector<128x128xf32>, vector<8x128xf32> -> vector<8x128xf32>
    %c0_9 = arith.constant 0 : index
    %c0_10 = arith.constant 0 : index
    %12 = vector.load %arg5[%c0_9, %c0_10] : memref<1x128xf32, #tpu.memory_space<vmem>>, vector<1x128xf32>
    %13 = vector.broadcast %12 : vector<1x128xf32> to vector<8x128xf32>
    %14 = arith.addf %11, %13 : vector<8x128xf32>
    %c0_11 = arith.constant 0 : index
    %c0_12 = arith.constant 0 : index
    %15 = vector.load %arg6[%c0_11, %c0_12] : memref<128x128xf32, #tpu.memory_space<vmem>>, vector<128x128xf32>
    %cst_13 = arith.constant dense<0.000000e+00> : vector<8x128xf32>
    %16 = tpu.matmul %9, %15, %cst_13 {dimension_numbers = #tpu.dot_dimension_numbers<[1], [0], [0], [1], [0, 0, 1, 1], [], []>} : vector<8x128xf32>, vector<128x128xf32>, vector<8x128xf32> -> vector<8x128xf32>
    %c0_14 = arith.constant 0 : index
    %c0_15 = arith.constant 0 : index
    %17 = vector.load %arg7[%c0_14, %c0_15] : memref<1x128xf32, #tpu.memory_space<vmem>>, vector<1x128xf32>
    %18 = vector.broadcast %17 : vector<1x128xf32> to vector<8x128xf32>
    %19 = arith.addf %16, %18 : vector<8x128xf32>
    %c0_16 = arith.constant 0 : index
    %c0_17 = arith.constant 0 : index
    %20 = vector.load %arg8[%c0_16, %c0_17] : memref<8x128xf32, #tpu.memory_space<vmem>>, vector<8x128xf32>
    tpu.vector_store %arg8[%c0_16, %c0_17], %14 {strides = array<i32>} : memref<8x128xf32, #tpu.memory_space<vmem>>, vector<8x128xf32>,
    %c0_18 = arith.constant 0 : index
    %c0_19 = arith.constant 0 : index
    %21 = vector.load %arg9[%c0_18, %c0_19] : memref<8x128xf32, #tpu.memory_space<vmem>>, vector<8x128xf32>
    tpu.vector_store %arg9[%c0_18, %c0_19], %19 {strides = array<i32>} : memref<8x128xf32, #tpu.memory_space<vmem>>, vector<8x128xf32>,
    return
  }
  func.func @transform_0(%arg0: i32) -> (i32, i32) {
    %c0_i32 = arith.constant 0 : i32
    %c0_i32_0 = arith.constant 0 : i32
    return %arg0, %c0_i32 : i32, i32
  }
  func.func @transform_1(%arg0: i32) -> (i32, i32) {
    %c0_i32 = arith.constant 0 : i32
    %c0_i32_0 = arith.constant 0 : i32
    %c0_i32_1 = arith.constant 0 : i32
    return %c0_i32, %c0_i32_0 : i32, i32
  }
  func.func @transform_2(%arg0: i32) -> (i32, i32) {
    %c0_i32 = arith.constant 0 : i32
    %c0_i32_0 = arith.constant 0 : i32
    %c0_i32_1 = arith.constant 0 : i32
    return %c0_i32, %c0_i32_0 : i32, i32
  }
  func.func @transform_3(%arg0: i32) -> (i32, i32) {
    %c0_i32 = arith.constant 0 : i32
    %c0_i32_0 = arith.constant 0 : i32
    %c0_i32_1 = arith.constant 0 : i32
    return %c0_i32, %c0_i32_0 : i32, i32
  }
  func.func @transform_4(%arg0: i32) -> (i32, i32) {
    %c0_i32 = arith.constant 0 : i32
    %c0_i32_0 = arith.constant 0 : i32
    %c0_i32_1 = arith.constant 0 : i32
    return %c0_i32, %c0_i32_0 : i32, i32
  }
  func.func @transform_5(%arg0: i32) -> (i32, i32) {
    %c0_i32 = arith.constant 0 : i32
    %c0_i32_0 = arith.constant 0 : i32
    %c0_i32_1 = arith.constant 0 : i32
    return %c0_i32, %c0_i32_0 : i32, i32
  }
  func.func @transform_6(%arg0: i32) -> (i32, i32) {
    %c0_i32 = arith.constant 0 : i32
    %c0_i32_0 = arith.constant 0 : i32
    %c0_i32_1 = arith.constant 0 : i32
    return %c0_i32, %c0_i32_0 : i32, i32
  }
  func.func @transform_7(%arg0: i32) -> (i32, i32) {
    %c0_i32 = arith.constant 0 : i32
    %c0_i32_0 = arith.constant 0 : i32
    return %arg0, %c0_i32 : i32, i32
  }
  func.func @transform_8(%arg0: i32) -> (i32, i32) {
    %c0_i32 = arith.constant 0 : i32
    %c0_i32_0 = arith.constant 0 : i32
    return %arg0, %c0_i32 : i32, i32
  }
}

</mosaic_0001>

<bundles_post_ra>
// kernel: tpu_custom_call.1
= control target key start
LH: loop header
LB: loop body
LE: loop exit
PB: predicated region body
PF: predicated region fallthrough
CT: control target
= control target key end

     0   :  { %s1599_s0 = inlined_call_operand.hbm [shape: f32[10,128], index: 0, kind: input, shape index: {}]   ;;  %s1600_s1 = inlined_call_operand.hbm [shape: f32[128,256], index: 1, kind: input, shape index: {}]   ;;  %s1601_s2 = inlined_call_operand.vmem [shape: f32[1,256], index: 2, kind: input, shape index: {}]   ;;  %s1602_s3 = inlined_call_operand.hbm [shape: f32[128,128], index: 3, kind: input, shape index: {}]   ;;  %s1603_s4 = inlined_call_operand.vmem [shape: f32[1,128], index: 4, kind: input, shape index: {}]   ;;  %s1604_s5 = inlined_call_operand.hbm [shape: f32[128,128], index: 5, kind: input, shape index: {}]   ;;  %s1605_s6 = inlined_call_operand.vmem [shape: f32[1,128], index: 6, kind: input, shape index: {}]   ;;  %s1606_s7 = inlined_call_operand.hbm [shape: f32[10,128], index: 7, kind: output, shape index: {0}]   ;;  %s1607_s8 = inlined_call_operand.hbm [shape: f32[10,128], index: 8, kind: output, shape index: {1}]  }
   0x1   :  { %1612 = sst [smem:[#allocation18_spill]] %s1600_s1 }
   0x2   :  { %1613 = sst [smem:[#allocation19_spill]] %s1602_s3 }
   0x3   :  { %1614 = sst [smem:[#allocation20_spill]] %s1604_s5 }
   0x4   :  { %14 = vsyncpa [#allocation3], 0 }
   0x5   :  { %16 = vsyncpa [#allocation3 + $0x1], 0 }
   0x6   :  { %17 = vsyncpa [#allocation6], 0 }
   0x7   :  { %18 = vsyncpa [#allocation9], 0 }
   0x8   :  { %19 = vsyncpa [#allocation4], 0 }
   0x9   :  { %21 = vsyncpa [#allocation4 + $0x1], 0 }
   0xa   :  { %22 = vsyncpa [#allocation12], 0 }
   0xb   :  { %24 = vsyncpa [#allocation12 + $0x1], 0  ;;  %s1327_s27 = smov 0   ;;  %s1329_s28 = smov 0  }
   0xc   :  { %s1331_s29 = smov 0   ;;  %s1333_s30 = smov 0  }
   0xd LB: > { %s1348_s9 = sadd.s32 4294967295, %s1268_s30   ;;  %s845_s10 = sadd.s32 4294967294, %s1268_s30   ;;  %s1268_s30 = sphi %s1333_s30, %s1637_s30   ;;  %s1264_s29 = sphi %s1331_s29, %s1636_s29   ;;  %s1260_s28 = sphi %s1329_s28, %s1635_s28   ;;  %s1256_s27 = sphi %s1327_s27, %s1634_s27  }
   0xe   : > { %p50_p0 = scmp.ne.s32.totalorder %s1260_s28, %s1256_s27  ;;  %p1608_p1 = scmp.eq.s32.totalorder %s1348_s9, 0 }
   0xf   : > { %p206_p3 = scmp.eq.s32.totalorder %s845_s10, 1  ;;  %p846_p5 = scmp.ge.s32.totalorder %s1268_s30, 1 }
  0x10   : > { %p1357_p4 = por %p1608_p1, %p50_p0  ;;  %p239_p7 = scmp.lt.s32.totalorder %s1268_s30, 3 }
  0x11   : > { %p1362_p6 = por %p206_p3, %p50_p0  ;;  %s1270_s14 = smov [#allocation5]  }
  0x12   : > { %s1615_s11 = scalar_select %p1357_p4, 1, 0 }
  0x13   : > { %s1616_s12 = scalar_select %p1362_p6, 1, 0 }
  0x14   : > { %p1367_p8 = pnand %p846_p5, %p239_p7  ;;  %s251_s15 = sshll.u32 %s1270_s14, 4  ;;  %s252_s15 = int_to_ptr.vmem [resolvable:$true] %s251_s15 }
  0x15   : > { %s1271_s17 = smov [#allocation7]   ;;  %s1071_s19 = scalar_lea.vmem %s252_s15, 4096 }
  0x16   : > { %s1617_s13 = scalar_select %p1367_p8, 1, 0 }
  0x17   : > { %p990_p9 = pneg %p1367_p8  ;;  %s267_s18 = sshll.u32 %s1271_s17, 4  ;;  %s268_s18 = int_to_ptr.vmem [resolvable:$true] %s267_s18 }
  0x18   : > { %p1072_p13 = scmp.ne.s32.totalorder %s252_s15, %s1071_s19  ;;  %p1079_p5 = scmp.lt.s32.totalorder %s252_s15, %s252_s15 }
  0x19   : > { %p1376_p11 = pnand %p990_p9, %p1608_p1  ;;  %p1080_p7 = scmp.lt.s32.totalorder %s1071_s19, %s1071_s19 }
  0x1b   : > { %p1062_p12 = pneg %p1376_p11  ;;  %p1081_p10 = por %p1080_p7, %p1079_p5 }
  0x1d   : > { %p1074_p0 = pnand %p1072_p13, %p1062_p12 }
  0x1f   : > { %p1075_p3 = pneg %p1074_p0 }
  0x21   : > { %p1082_p9 = pnand %p1081_p10, %p1075_p3 }
  0x23   : > { %1085 = shalt.err (!%p1082_p9)
}
  0x24   : > { %s1272_s20 = smov 256   ;;  %s1273_s21 = smov 16  }
  0x25   : > { %s1619_s1 = sld [smem:[#allocation18_spill]]  ;;  %s1097_s24 = scalar_lea.vmem %s268_s18, 2048 }
  0x26   : > { %p1098_p1 = scmp.ne.s32.totalorder %s268_s18, %s1097_s24  ;;  %p1105_p2 = scmp.lt.s32.totalorder %s268_s18, %s268_s18 }
  0x27   : > { %p1106_p6 = scmp.lt.s32.totalorder %s1097_s24, %s1097_s24 }
  0x28   : > { %p1100_p13 = pnand %p1098_p1, %p1062_p12 }
  0x29   : > { %p1107_p5 = por %p1106_p6, %p1105_p2 }
  0x2a   : > { %p1101_p0 = pneg %p1100_p13 }
  0x2b   : > { %993 = dma.hbm_to_vmem [thread:$0]  (!%p1376_p11), %s1619_s1, 4096, %s252_s15, [#allocation6], %s1272_s20, %s1272_s20, %s1273_s21  }
  0x2c   : > { %p1108_p10 = pnand %p1107_p5, %p1101_p0 }
  0x2e   : > { %1111 = shalt.err (!%p1108_p10)
}
  0x2f   : > { %s1274_s25 = smov 128   ;;  %s1275_s26 = smov 8  }
  0x30   : > { %s1620_s3 = sld [smem:[#allocation19_spill]]  ;;  %s1276_s15 = smov [#allocation8]  }
  0x31   : > { %s283_s17 = sshll.u32 %s1276_s15, 4  ;;  %s1399_s19 = sadd.s32 1, %s1268_s30   ;;  %s284_s17 = int_to_ptr.vmem [resolvable:$true] %s283_s17 }
  0x32   : > { %s1123_s20 = scalar_lea.vmem %s284_s17, 2048  ;;  %p1131_p3 = scmp.lt.s32.totalorder %s284_s17, %s284_s17 }
  0x33   : > { %p1124_p1 = scmp.ne.s32.totalorder %s284_s17, %s1123_s20  ;;  %p1132_p7 = scmp.lt.s32.totalorder %s1123_s20, %s1123_s20 }
  0x35   : > { %p1126_p2 = pnand %p1124_p1, %p1062_p12  ;;  %p1133_p9 = por %p1132_p7, %p1131_p3 }
  0x36   : > { %996 = dma.hbm_to_vmem [thread:$0]  (!%p1376_p11), %s1620_s3, 2048, %s268_s18, [#allocation6], %s1274_s25, %s1274_s25, %s1275_s26  }
  0x37   : > { %p1127_p6 = pneg %p1126_p2 }
  0x39   : > { %p1134_p13 = pnand %p1133_p9, %p1127_p6 }
  0x3b   : > { %1137 = shalt.err (!%p1134_p13)
}
  0x3c   : > { %s1621_s5 = sld [smem:[#allocation20_spill]]  ;;  %s34_s22 = ssub.s32 %s1268_s30, %s1399_s19 }
  0x3d   : > { %s37_s23 = sadd.s32 1, %s1264_s29  ;;  %p35_p12 = scmp.eq.s32.totalorder %s34_s22, 0 }
  0x3e   : > { %p44_p0 = scmp.ne.s32.totalorder %s1264_s29, %s1260_s28  ;;  %p45_p5 = scmp.eq.s32.totalorder %s1268_s30, 0 }
  0x3f   : > { %p1014_p10 = scmp.lt.s32.totalorder %s1268_s30, 2  ;;  %p1622_p2 = scmp.eq.s32.totalorder %s1348_s9, 1 }
  0x40   : > { %s1417_s16 = scalar_select %p35_p12, %s1264_s29, %s37_s23  }
  0x41   : > { %p46_p1 = por %p45_p5, %p44_p0  ;;  %p1421_p6 = por %p1622_p2, %p44_p0 }
  0x42   : > { %999 = dma.hbm_to_vmem [thread:$0]  (!%p1376_p11), %s1621_s5, 2048, %s284_s17, [#allocation9], %s1274_s25, %s1274_s25, %s1275_s26  }
  0x43   : > { %s1623_s24 = scalar_select %p1421_p6, 1, 0 }
  0x44   : > { %s300_s10 = sand.u32 1, %s1264_s29   ;;  %s852_s14 = sshll.u32 %s1268_s30, 7 }
  0x45   : > { %s851_s15 = sshll.u32 %s300_s10, 3  ;;  %s1430_s25 = scalar_lea.hbm %s1599_s0, %s852_s14 }
  0x46   : > { %s304_s26 = scalar_lea.vmem [#allocation2], %s851_s15  ;;  %p1432_p11 = pnand %p1014_p10, %p46_p1 }
  0x47   : > { %s311_s17 = sshll.u32 %s304_s26, 4  ;;  %s301_s22 = scalar_lea.sflag [#allocation3], %s300_s10  ;;  %s312_s17 = int_to_ptr.vmem [resolvable:$true] %s311_s17 }
  0x48   : > { %s1138_s23 = scalar_lea.hbm %s1430_s25, 128  ;;  %p1140_p7 = pneg %p1432_p11 }
  0x49   : > { %p1139_p3 = scmp.ne.s32.totalorder %s1430_s25, %s1138_s23  ;;  %s1143_s21 = scalar_lea.hbm %s1599_s0, 256 }
  0x4a   : > { %p1144_p12 = scmp.lt.s32.totalorder %s1430_s25, %s1599_s0  ;;  %p1145_p0 = scmp.lt.s32.totalorder %s1143_s21, %s1138_s23 }
  0x4b   : > { %p1141_p9 = pnand %p1140_p7, %p1139_p3 }
  0x4c   : > { %p1146_p5 = por %p1145_p0, %p1144_p12 }
  0x4d   : > { %p1142_p13 = pneg %p1141_p9 }
  0x4f   : > { %p1147_p10 = pnand %p1146_p5, %p1142_p13 }
  0x51   : > { %1150 = shalt.err (!%p1147_p10)
}
  0x52   : > { %s1151_s26 = scalar_lea.vmem %s312_s17, 128  ;;  %s1277_s10 = smov [#allocation2]  }
  0x53   : > { %p1152_p1 = scmp.ne.s32.totalorder %s312_s17, %s1151_s26  ;;  %s1156_s3 = sshll.u32 %s1277_s10, 4  ;;  %s1157_s3 = int_to_ptr.vmem [resolvable:$false] %s1156_s3 }
  0x54   : > { %s1158_s5 = scalar_lea.vmem %s1157_s3, 256  ;;  %p1159_p3 = scmp.lt.s32.totalorder %s312_s17, %s1157_s3 }
  0x55   : > { %p1154_p2 = pnand %p1152_p1, %p1140_p7  ;;  %p1160_p9 = scmp.lt.s32.totalorder %s1158_s5, %s1151_s26 }
  0x57   : > { %p1155_p6 = pneg %p1154_p2  ;;  %p1161_p4 = por %p1160_p9, %p1159_p3 }
  0x59   : > { %p1162_p8 = pnand %p1161_p4, %p1155_p6 }
  0x5b   : > { %1165 = shalt.err (!%p1162_p8)
}
  0x5c   : > { %1003 = dma.hbm_to_vmem [thread:$0]  (!%p1432_p11), %s1430_s25, 128, %s312_s17, %s301_s22  }
  0x5d   : > { %p1625_p13 = scmp.ne.s32.totalorder %s1617_s13, 0 }
  0x5e   : > { %s1453_s1 = sand.u32 (!%p1625_p13), 1, %s1260_s28   ;;  %p1626_p4 = scmp.ne.s32.totalorder (!%p1625_p13), %s1615_s11, 0 }
  0x5f   : > { %320 = sbr.rel (%p1625_p13) target bundleno = 570 (0x23a), region = 48  ;;  %s1456_s23 = sshll.u32 (!%p1625_p13), %s1453_s1, 3 }
  0x60   : > { %s323_s3 = scalar_lea.sflag (!%p1625_p13), [#allocation3], %s1453_s1  ;;  %s326_s5 = scalar_lea.vmem (!%p1625_p13), [#allocation2], %s1456_s23 }
  0x64   : > { %1235 = dma.done.wait (%p1626_p4), %s323_s3, 128  }
  0x65   : > { %1237 = vsyncadd (%p1626_p4), %s323_s3, 4294967168  ;;  %p1627_p8 = scmp.eq.s32.totalorder %s1348_s9, 0 }
  0x67   : > { %1239 = dma.done.wait (%p1627_p8), [#allocation6], 6144   ;;  %p1628_p6 = pmov %p1627_p8 }
  0x69   : > { %1241 = vsyncadd (%p1628_p6), [#allocation6], 4294961152  ;;  %p1629_p11 = pmov %p1628_p6 }
  0x6a   : > { %p1630_p7 = pmov %p1628_p6 }
  0x6b   : > { %1243 = dma.done.wait (%p1629_p11), [#allocation9], 2048  }
  0x6c   : > { %1245 = vsyncadd (%p1630_p7), [#allocation9], 4294965248  ;;  %v1278_v0 = vmov 0.0   ;;  %v408_v1 = vld [vmem:[#allocation5 + $0xf8] sm:$0xff]  ;;  %v407_v2 = vld [vmem:[#allocation5 + $0xf0] sm:$0xff]  ;;  %vm1279_vm0 = vmmov 0  }
  0x6d   : > { %485 = vmatprep.mubr.f32.mxu0 %v1278_v0  ;;  %902 = vmatprep.subr.mxu1 %v1278_v0  ;;  %v406_v3 = vld [vmem:[#allocation5 + $0xe8] sm:$0xff]  ;;  %v405_v4 = vld [vmem:[#allocation5 + $0xe0] sm:$0xff]  ;;  %v404_v5 = vld [vmem:[#allocation5 + $0xd8] sm:$0xff]  ;;  %s864_s18 = sshll.u32 %s1348_s9, 7  ;;  %s368_s22 = scalar_lea.vmem [#allocation10], %s1456_s23 }
  0x6e   : > { %421 = vmatprep.subr.mxu0 %v408_v1  ;;  %v403_v6 = vld [vmem:[#allocation5 + $0xd0] sm:$0xff]  ;;  %v402_v7 = vld [vmem:[#allocation5 + $0xc8] sm:$0xff]  ;;  %v401_v8 = vld [vmem:[#allocation5 + $0xc0] sm:$0xff]  ;;  %934 = vmatprep.mubr.msk.f32.mxu1 %vm1279_vm0, %v1278_v0  ;;  %s701_s14 = sshll.u32 %s368_s22, 4  ;;  %s375_s15 = scalar_lea.vmem [#allocation11], %s1456_s23  ;;  %s1528_s14 = int_to_ptr.vmem [resolvable:$true] %s701_s14 }
  0x6f   : > { %422 = vmatpush1.msra.mxu0 %v407_v2  ;;  %v400_v9 = vld [vmem:[#allocation5 + $0xb8] sm:$0xff]  ;;  %v399_v10 = vld [vmem:[#allocation5 + $0xb0] sm:$0xff]  ;;  %v398_v11 = vld [vmem:[#allocation5 + $0xa8] sm:$0xff]  ;;  %s714_s26 = sshll.u32 %s375_s15, 4  ;;  %s1533_s13 = scalar_lea.hbm %s1607_s8, %s864_s18  ;;  %s1535_s26 = int_to_ptr.vmem [resolvable:$true] %s714_s26 }
  0x70   : > { %423 = vmatprep.subr.mxu0 %v406_v3  ;;  %v397_v12 = vld [vmem:[#allocation5 + $0xa0] sm:$0xff]  ;;  %v396_v13 = vld [vmem:[#allocation5 + $0x98] sm:$0xff]  ;;  %v395_v14 = vld [vmem:[#allocation5 + $0x90] sm:$0xff]  ;;  %v411_v3 = vlaneseq  ;;  %s683_s25 = scalar_lea.sflag [#allocation4], %s1453_s1  ;;  %s1166_s17 = scalar_lea.vmem %s1528_s14, 128 }
  0x71   : > { %424 = vmatpush1.msra.mxu0 %v405_v4  ;;  %v509_v15 = vld [vmem:[#allocation7 + $0x78] sm:$0xff]  ;;  %v508_v16 = vld [vmem:[#allocation7 + $0x70] sm:$0xff]  ;;  %v394_v17 = vld [vmem:[#allocation5 + $0x88] sm:$0xff]  ;;  %p1167_p12 = scmp.ne.s32.totalorder %s1528_s14, %s1166_s17  ;;  %p1631_p0 = scmp.ne.s32.totalorder %s1623_s24, 0 }
  0x72   : > { %425 = vmatprep.subr.mxu0 %v404_v5  ;;  %903 = vmatpush3.msra.mxu1 %v509_v15  ;;  %v393_v18 = vld [vmem:[#allocation5 + $0x80] sm:$0xff]  ;;  %v507_v19 = vld [vmem:[#allocation7 + $0x68] sm:$0xff]  ;;  %v392_v20 = vld [vmem:[#allocation5 + $0x78] sm:$0xff]  ;;  %v412_v4 = vshrl.u32 %v411_v3, 7  ;;  %s1280_s20 = smov [#allocation10]  }
  0x73   : > { %426 = vmatpush1.msra.mxu0 %v403_v6  ;;  %904 = vmatprep.subr.mxu1 %v1278_v0  ;;  %v391_v21 = vld [vmem:[#allocation5 + $0x70] sm:$0xff]  ;;  %v506_v22 = vld [vmem:[#allocation7 + $0x60] sm:$0xff]  ;;  %v390_v23 = vld [vmem:[#allocation5 + $0x68] sm:$0xff]  ;;  %p1168_p5 = pnand %p1167_p12, %p1631_p0  ;;  %s1170_s21 = sshll.u32 %s1280_s20, 4  ;;  %s1171_s21 = int_to_ptr.vmem [resolvable:$false] %s1170_s21 }
  0x74   : > { %427 = vmatprep.subr.mxu0 %v402_v7  ;;  %905 = vmatpush3.msra.mxu1 %v508_v16  ;;  %v389_v24 = vld [vmem:[#allocation5 + $0x60] sm:$0xff]  ;;  %v505_v25 = vld [vmem:[#allocation7 + $0x58] sm:$0xff]  ;;  %v387_v27 = vld [vmem:[#allocation5 + $0x50] sm:$0xff]  ;;  %v413_v5 = vsub.s32 0, %v412_v4  ;;  %v417_v7 = vsub.s32 1, %v412_v4  ;;  %s1172_s10 = scalar_lea.vmem %s1171_s21, 256  ;;  %p1173_p1 = scmp.lt.s32.totalorder %s1528_s14, %s1171_s21 }
  0x75   : > { %428 = vmatpush1.msra.mxu0 %v401_v8  ;;  %906 = vmatprep.subr.mxu1 %v1278_v0  ;;  %v388_v26 = vld [vmem:[#allocation5 + $0x58] sm:$0xff]  ;;  %v504_v28 = vld [vmem:[#allocation7 + $0x50] sm:$0xff]  ;;  %v386_v29 = vld [vmem:[#allocation5 + $0x48] sm:$0xff]  ;;  %p1169_p10 = pneg %p1168_p5  ;;  %p1174_p2 = scmp.lt.s32.totalorder %s1172_s10, %s1166_s17 }
  0x76   : > { %429 = vmatprep.subr.mxu0 %v400_v9  ;;  %907 = vmatpush3.msra.mxu1 %v507_v19  ;;  %v385_v30 = vld [vmem:[#allocation5 + $0x40] sm:$0xff]  ;;  %v503_v31 = vld [vmem:[#allocation7 + $0x48] sm:$0xff]  ;;  %v384_v32 = vld [vmem:[#allocation5 + $0x38] sm:$0xff] }
  0x77   : > { %430 = vmatpush1.msra.mxu0 %v399_v10  ;;  %908 = vmatprep.subr.mxu1 %v1278_v0  ;;  %v383_v33 = vld [vmem:[#allocation5 + $0x30] sm:$0xff]  ;;  %v502_v34 = vld [vmem:[#allocation7 + $0x40] sm:$0xff]  ;;  %v382_v35 = vld [vmem:[#allocation5 + $0x28] sm:$0xff]  ;;  %p1175_p3 = por %p1174_p2, %p1173_p1 }
  0x78   : > { %431 = vmatprep.subr.mxu0 %v398_v11  ;;  %909 = vmatpush3.msra.mxu1 %v506_v22  ;;  %v381_v36 = vld [vmem:[#allocation5 + $0x20] sm:$0xff]  ;;  %v501_v37 = vld [vmem:[#allocation7 + $0x38] sm:$0xff]  ;;  %v379_v39 = vld [vmem:[#allocation5 + $0x10] sm:$0xff] }
  0x79   : > { %432 = vmatpush1.msra.mxu0 %v397_v12  ;;  %910 = vmatprep.subr.mxu1 %v1278_v0  ;;  %v380_v38 = vld [vmem:[#allocation5 + $0x18] sm:$0xff]  ;;  %v500_v40 = vld [vmem:[#allocation7 + $0x30] sm:$0xff]  ;;  %v378_v41 = vld [vmem:[#allocation5 + $0x8] sm:$0xff]  ;;  %p1176_p9 = pnand %p1175_p3, %p1169_p10 }
  0x7a   : > { %433 = vmatprep.subr.mxu0 %v396_v13  ;;  %911 = vmatpush3.msra.mxu1 %v505_v25  ;;  %v377_v42 = vld [vmem:[#allocation5] sm:$0xff]  ;;  %v499_v43 = vld [vmem:[#allocation7 + $0x28] sm:$0xff]  ;;  %v376_v44 = vld [vmem:[%s326_s5] sm:$0xff]  ;;  %s1526_s5 = scalar_lea.hbm %s1606_s7, %s864_s18 }
  0x7b   : > { %434 = vmatpush1.msra.mxu0 %v395_v14  ;;  %912 = vmatprep.subr.mxu1 %v1278_v0  ;;  %v602_v45 = vld [vmem:[#allocation8 + $0x78] sm:$0xff]  ;;  %v498_v46 = vld [vmem:[#allocation7 + $0x20] sm:$0xff]  ;;  %v601_v47 = vld [vmem:[#allocation8 + $0x70] sm:$0xff] }
  0x7c   : > { %435 = vmatprep.subr.mxu0 %v394_v17  ;;  %913 = vmatpush3.msra.mxu1 %v504_v28  ;;  %v497_v48 = vld [vmem:[#allocation7 + $0x18] sm:$0xff]  ;;  %v600_v49 = vld [vmem:[#allocation8 + $0x68] sm:$0xff]  ;;  %v599_v50 = vld [vmem:[#allocation8 + $0x60] sm:$0xff] }
  0x7d   : > { %436 = vmatpush1.msra.mxu0 %v393_v18  ;;  %914 = vmatprep.subr.mxu1 %v1278_v0  ;;  %v598_v51 = vld [vmem:[#allocation8 + $0x58] sm:$0xff]  ;;  %v597_v52 = vld [vmem:[#allocation8 + $0x50] sm:$0xff]  ;;  %v596_v53 = vld [vmem:[#allocation8 + $0x48] sm:$0xff] }
  0x7e   : > { %437 = vmatprep.subr.mxu0 %v392_v20  ;;  %915 = vmatpush3.msra.mxu1 %v503_v31  ;;  %v595_v54 = vld [vmem:[#allocation8 + $0x40] sm:$0xff]  ;;  %v594_v55 = vld [vmem:[#allocation8 + $0x38] sm:$0xff]  ;;  %v593_v56 = vld [vmem:[#allocation8 + $0x30] sm:$0xff] }
  0x7f   : > { %438 = vmatpush1.msra.mxu0 %v391_v21  ;;  %916 = vmatprep.subr.mxu1 %v1278_v0  ;;  %v592_v57 = vld [vmem:[#allocation8 + $0x28] sm:$0xff]  ;;  %v591_v58 = vld [vmem:[#allocation8 + $0x20] sm:$0xff]  ;;  %v496_v59 = vld [vmem:[#allocation7 + $0x10] sm:$0xff] }
  0x80   : > { %439 = vmatprep.subr.mxu0 %v390_v23  ;;  %917 = vmatpush3.msra.mxu1 %v502_v34  ;;  %v590_v60 = vld [vmem:[#allocation8 + $0x18] sm:$0xff]  ;;  %v495_v61 = vld [vmem:[#allocation7 + $0x8] sm:$0xff]  ;;  %v589_v62 = vld [vmem:[#allocation8 + $0x10] sm:$0xff] }
  0x81   : > { %440 = vmatpush1.msra.mxu0 %v389_v24  ;;  %918 = vmatprep.subr.mxu1 %v1278_v0  ;;  %v494_v63 = vld [vmem:[#allocation7] sm:$0xff]  ;;  %v588_v1 = vld [vmem:[#allocation8 + $0x8] sm:$0xff]  ;;  %v409_v6 = vld [vmem:[%s1601_s2] sm:$0x3] }
  0x82   : > { %441 = vmatprep.subr.mxu0 %v388_v26  ;;  %919 = vmatpush3.msra.mxu1 %v501_v37  ;;  %v587_v2 = vld [vmem:[#allocation8] sm:$0xff]  ;;  %v414_v8 = vrot.slane %v409_v6, %v413_v5  ;;  %v418_v9 = vrot.slane %v409_v6, %v417_v7  ;;  %v860_v15 = vld [vmem:[%s1603_s4] ss:$0 sm:$0xff] }
  0x83   : > { %442 = vmatpush1.msra.mxu0 %v387_v27  ;;  %920 = vmatprep.subr.mxu1 %v1278_v0  ;;  %v861_v17 = vld [vmem:[%s1605_s6] ss:$0 sm:$0xff] }
  0x84   : > { %443 = vmatprep.subr.mxu0 %v386_v29  ;;  %921 = vmatpush3.msra.mxu1 %v500_v40 }
  0x85   : > { %444 = vmatpush1.msra.mxu0 %v385_v30  ;;  %922 = vmatprep.subr.mxu1 %v1278_v0 }
  0x86   : > { %445 = vmatprep.subr.mxu0 %v384_v32  ;;  %923 = vmatpush3.msra.mxu1 %v499_v43 }
  0x87   : > { %446 = vmatpush1.msra.mxu0 %v383_v33  ;;  %924 = vmatprep.subr.mxu1 %v1278_v0 }
  0x88   : > { %447 = vmatprep.subr.mxu0 %v382_v35  ;;  %925 = vmatpush3.msra.mxu1 %v498_v46 }
  0x89   : > { %448 = vmatpush1.msra.mxu0 %v381_v36  ;;  %926 = vmatprep.subr.mxu1 %v1278_v0 }
  0x8a   : > { %449 = vmatprep.subr.mxu0 %v380_v38  ;;  %927 = vmatpush3.msra.mxu1 %v497_v48 }
  0x8b   : > { %450 = vmatpush1.msra.mxu0 %v379_v39  ;;  %928 = vmatprep.subr.mxu1 %v1278_v0 }
  0x8c   : > { %451 = vmatprep.subr.mxu0 %v378_v41  ;;  %929 = vmatpush3.msra.mxu1 %v496_v59 }
  0x8d   : > { %452 = vmatpush1.msra.mxu0 %v377_v42  ;;  %930 = vmatprep.subr.mxu1 %v1278_v0 }
  0x8e   : > { %486 = vmatmul.mubr.f32.vlgmr.msra.gmra.mxu0 %v376_v44  ;;  %937 = vmatprep.subr.mxu0 %v1278_v0 }
  0x8f   : > { %938 = vmatpush3.msra.mxu0 %v602_v45  ;;  %931 = vmatpush3.msra.mxu1 %v495_v61 }
  0x90   : > { %939 = vmatprep.subr.mxu0 %v1278_v0  ;;  %932 = vmatprep.subr.mxu1 %v1278_v0 }
  0x91   : > { %940 = vmatpush3.msra.mxu0 %v601_v47  ;;  %933 = vmatpush3.msra.mxu1 %v494_v63 }
  0x92   : > { %941 = vmatprep.subr.mxu0 %v1278_v0  ;;  %969 = vmatprep.mubr.msk.f32.mxu0 %vm1279_vm0, %v1278_v0 }
  0x93   : > { %942 = vmatpush3.msra.mxu0 %v600_v49 }
  0x94   : > { %943 = vmatprep.subr.mxu0 %v1278_v0 }
  0x95   : > { %944 = vmatpush3.msra.mxu0 %v599_v50 }
  0x96   : > { %945 = vmatprep.subr.mxu0 %v1278_v0 }
  0x97   : > { %946 = vmatpush3.msra.mxu0 %v598_v51 }
  0x98   : > { %947 = vmatprep.subr.mxu0 %v1278_v0 }
  0x99   : > { %948 = vmatpush3.msra.mxu0 %v597_v52 }
  0x9a   : > { %949 = vmatprep.subr.mxu0 %v1278_v0 }
  0x9b   : > { %950 = vmatpush3.msra.mxu0 %v596_v53 }
  0x9c   : > { %951 = vmatprep.subr.mxu0 %v1278_v0 }
  0x9d   : > { %952 = vmatpush3.msra.mxu0 %v595_v54 }
  0x9e   : > { %953 = vmatprep.subr.mxu0 %v1278_v0 }
  0x9f   : > { %954 = vmatpush3.msra.mxu0 %v594_v55 }
  0xa0   : > { %955 = vmatprep.subr.mxu0 %v1278_v0 }
  0xa1   : > { %956 = vmatpush3.msra.mxu0 %v593_v56 }
  0xa2   : > { %957 = vmatprep.subr.mxu0 %v1278_v0 }
  0xa3   : > { %958 = vmatpush3.msra.mxu0 %v592_v57 }
  0xa4   : > { %959 = vmatprep.subr.mxu0 %v1278_v0 }
  0xa5   : > { %960 = vmatpush3.msra.mxu0 %v591_v58 }
  0xa6   : > { %961 = vmatprep.subr.mxu0 %v1278_v0 }
  0xa7   : > { %962 = vmatpush3.msra.mxu0 %v590_v60 }
  0xa8   : > { %963 = vmatprep.subr.mxu0 %v1278_v0 }
  0xa9   : > { %964 = vmatpush3.msra.mxu0 %v589_v62 }
  0xaa   : > { %965 = vmatprep.subr.mxu0 %v1278_v0 }
  0xab   : > { %966 = vmatpush3.msra.mxu0 %v588_v1 }
  0xac   : > { %967 = vmatprep.subr.mxu0 %v1278_v0 }
  0xad   : > { %968 = vmatpush3.msra.mxu0 %v587_v2 }
 0x14e   : > { %v487_v10 = vpop.f32.mrf.mxu0 }
 0x14f   : > { %v488_v11 = vadd.f32 %v487_v10, %v414_v8 }
 0x150   : > { %v489_v12 = vpop.f32.mrf.mxu0 }
 0x151   : > { %v492_v13 = vmax.f32 %v488_v11, 0.0  ;;  %v490_v0 = vadd.f32 %v489_v12, %v418_v9 }
 0x153   : > { %v493_v14 = vmax.f32 %v490_v0, 0.0  ;;  %935 = vmatmul.mubr.f32.vlgmr.msra.gmra.mxu1 %v492_v13 }
 0x155   : > { %970 = vmatmul.mubr.f32.vlgmr.msra.gmra.mxu0 %v493_v14 }
 0x213   : > { %v583_v16 = vpop.f32.mrf.mxu1 }
 0x214   : > { %v584_v18 = vadd.f32 %v860_v15, %v583_v16 }
 0x215   : > { %v936_v19 = vpop.f32.mrf.mxu1  ;;  %v676_v20 = vpop.f32.mrf.mxu0 }
 0x216   : > { %680 = vst [vmem:[%s368_s22] sm:$0xff] %v584_v18  ;;  %v677_v21 = vadd.f32 %v861_v17, %v676_v20 }
 0x217   : > { %v971_v22 = vpop.f32.mrf.mxu0 }
 0x218   : > { %1179 = shalt.err (!%p1176_p9)
}
 0x219   : > { %s1180_s18 = scalar_lea.hbm %s1526_s5, 128  ;;  %s1184_s9 = scalar_lea.hbm %s1606_s7, 256 }
 0x21a   : > { %p1181_p13 = scmp.ne.s32.totalorder %s1526_s5, %s1180_s18  ;;  %p1185_p6 = scmp.lt.s32.totalorder %s1526_s5, %s1606_s7 }
 0x21b   : > { %p1186_p11 = scmp.lt.s32.totalorder %s1184_s9, %s1180_s18 }
 0x21c   : > { %p1182_p4 = pnand %p1181_p13, %p1631_p0 }
 0x21d   : > { %p1187_p7 = por %p1186_p11, %p1185_p6 }
 0x21e   : > { %p1183_p8 = pneg %p1182_p4 }
 0x220   : > { %p1188_p12 = pnand %p1187_p7, %p1183_p8 }
 0x222   : > { %1191 = shalt.err (!%p1188_p12)
}
 0x223   : > { %986 = dma.vmem_to_hbm [thread:$0]  (%p1631_p0), %s1528_s14, 128, %s1526_s5, %s683_s25   ;;  %681 = vst [vmem:[%s375_s15] sm:$0xff] %v677_v21 }
 0x224   : > { %s688_s17 = scalar_lea.sflag [#allocation12], %s1453_s1  ;;  %s1192_s21 = scalar_lea.vmem %s1535_s26, 128 }
 0x225   : > { %p1193_p5 = scmp.ne.s32.totalorder %s1535_s26, %s1192_s21  ;;  %s1281_s10 = smov [#allocation11]  }
 0x226   : > { %s1196_s18 = sshll.u32 %s1281_s10, 4  ;;  %s1197_s18 = int_to_ptr.vmem [resolvable:$false] %s1196_s18 }
 0x227   : > { %p1194_p10 = pnand %p1193_p5, %p1631_p0  ;;  %s1198_s22 = scalar_lea.vmem %s1197_s18, 256 }
 0x228   : > { %p1199_p2 = scmp.lt.s32.totalorder %s1535_s26, %s1197_s18  ;;  %p1200_p3 = scmp.lt.s32.totalorder %s1198_s22, %s1192_s21 }
 0x229   : > { %p1195_p1 = pneg %p1194_p10 }
 0x22a   : > { %p1201_p9 = por %p1200_p3, %p1199_p2 }
 0x22c   : > { %p1202_p13 = pnand %p1201_p9, %p1195_p1 }
 0x22e   : > { %1205 = shalt.err (!%p1202_p13)
}
 0x22f   : > { %s1206_s23 = scalar_lea.hbm %s1533_s13, 128  ;;  %s1210_s15 = scalar_lea.hbm %s1607_s8, 256 }
 0x230   : > { %p1207_p4 = scmp.ne.s32.totalorder %s1533_s13, %s1206_s23  ;;  %p1211_p11 = scmp.lt.s32.totalorder %s1533_s13, %s1607_s8 }
 0x231   : > { %p1212_p7 = scmp.lt.s32.totalorder %s1210_s15, %s1206_s23 }
 0x232   : > { %p1208_p8 = pnand %p1207_p4, %p1631_p0 }
 0x233   : > { %p1213_p12 = por %p1212_p7, %p1211_p11 }
 0x234   : > { %p1209_p6 = pneg %p1208_p8 }
 0x236   : > { %p1214_p5 = pnand %p1213_p12, %p1209_p6 }
 0x238   : > { %1217 = shalt.err (!%p1214_p5)
}
 0x239   : > { %987 = dma.vmem_to_hbm [thread:$0]  (%p1631_p0), %s1535_s26, 128, %s1533_s13, %s688_s17  }
 0x23a PF: > { %s726_s3 = sand.u32 1, %s1256_s27   ;;  %p1632_p10 = scmp.ne.s32.totalorder %s1616_s12, 0 }
 0x23b   : > { %p1633_p1 = scmp.ge.s32.totalorder %s1268_s30, 2  ;;  %s727_s9 = scalar_lea.sflag [#allocation4], %s726_s3 }
 0x23d   : > { %p1005_p2 = pnand %p1633_p1, %p1632_p10 }
 0x23f   : > { %p1006_p3 = pneg %p1005_p2 }
 0x241   : > { %1247 = dma.done.wait (%p1006_p3), %s727_s9, 128  }
 0x242   : > { %1249 = vsyncadd (%p1006_p3), %s727_s9, 4294967168  ;;  %s736_s11 = scalar_lea.sflag [#allocation12], %s726_s3 }
 0x243   : > { %1251 = dma.done.wait (%p1006_p3), %s736_s11, 128  }
 0x244   : > { %1253 = vsyncadd (%p1006_p3), %s736_s11, 4294967168  ;;  %p27_p0 = scmp.ge.s32.totalorder %s1399_s19, 4   ;;  %s1634_s27 = smov %s1260_s28 }
 0x245   : > { %s1635_s28 = smov %s1264_s29  ;;  %s1636_s29 = smov %s1417_s16 }
 0x246   : > { %s1637_s30 = smov %s1399_s19  ;;  %29 = sbr.rel (!%p27_p0) target bundleno = 13 (0xd), region = 122 }
 0x24b   :  { %741 = vsyncpa [#allocation3], 1 }
 0x24c   :  { %743 = vsyncpa [#allocation3 + $0x1], 1 }
 0x24d   :  { %744 = vsyncpa [#allocation6], 1 }
 0x24e   :  { %745 = vsyncpa [#allocation9], 1 }
 0x24f   :  { %746 = vsyncpa [#allocation4], 1 }
 0x250   :  { %748 = vsyncpa [#allocation4 + $0x1], 1 }
 0x251   :  { %749 = vsyncpa [#allocation12], 1 }
 0x252   :  { %751 = vsyncpa [#allocation12 + $0x1], 1 }

</bundles_post_ra>
